<compile_context>
chip_gen: v7x
topology: tpu7x:2x2x1
jax: 0.10.0
libtpu: 0.0.40
codegen_flags: <defaults>
</compile_context>

<pallas_src>
import functools
import math

import jax
import jax.numpy as jnp
from jax import lax
from jax.experimental import pallas as pl
from jax.experimental.pallas import tpu as pltpu


def _dotgat_kernel(edges_ref, qT_ref, kT_ref, res_ref, out_ref,
                   agg_sc, m_sc, l_sc,
                   *, num_nodes, num_edges, edge_tile):
    t = pl.program_id(0)

    # ---- init accumulators on the first edge tile.
    @pl.when(t == 0)
    def _init():
        agg_sc[...] = jnp.zeros(agg_sc.shape, jnp.float32)
        m_sc[...] = jnp.full(m_sc.shape, -1e30, jnp.float32)
        l_sc[...] = jnp.zeros(l_sc.shape, jnp.float32)

    # ---- per-tile edge indices (single packed [2, tE] int32 block).
    edges = edges_ref[...]                      # [2, tE] int32
    row = edges[0:1, :]                         # [1, tE]
    col = edges[1:2, :]                         # [1, tE]

    # In-kernel one-hot masks (VPU iota/compare); padded edges carry the
    # out-of-range node id `num_nodes` and therefore match no row.
    node_iota = lax.broadcasted_iota(jnp.int32, (num_nodes, edge_tile), 0)
    gather_row = (node_iota == row).astype(jnp.bfloat16)    # [N, tE]
    gather_col = (node_iota == col).astype(jnp.bfloat16)    # [N, tE]

    # ---- MXU gathers: Q[row], K[col] in feature-on-sublane layout [Fout, tE].
    q_row = jnp.dot(qT_ref[...], gather_row, preferred_element_type=jnp.float32)
    k_col = jnp.dot(kT_ref[...], gather_col, preferred_element_type=jnp.float32)

    # ---- lane-dense per-edge logits; 1/sqrt(Fout) already folded into K.
    logits = jnp.sum(q_row * k_col, axis=0, keepdims=True)   # [1, tE] f32

    # Padded edges must not contribute to the global softmax.
    edge_ids = t * edge_tile + lax.broadcasted_iota(jnp.int32, (1, edge_tile), 1)
    logits = jnp.where(edge_ids < num_edges, logits, -1e30)

    # ---- flash-style online softmax over ALL edges (dim=0 in the PyTorch module).
    m_prev = m_sc[...]                                                    # [1, 1]
    m_new = jnp.maximum(m_prev, jnp.max(logits, axis=1, keepdims=True))   # [1, 1]
    corr = jnp.exp(m_prev - m_new)                                        # [1, 1]
    p = jnp.exp(logits - m_new)                                           # [1, tE]
    l_sc[...] = corr * l_sc[...] + jnp.sum(p, axis=1, keepdims=True)
    m_sc[...] = m_new

    # ---- weighted messages, scatter-added over `col` straight into [N, Fout]:
    #      contrib = gather_col @ msg^T  (contract the shared edge axis on the MXU).
    msg = (q_row * p).astype(jnp.bfloat16)                                # [Fout, tE]
    contrib = lax.dot_general(
        gather_col, msg,
        dimension_numbers=(((1,), (1,)), ((), ())),
        preferred_element_type=jnp.float32)                               # [N, Fout]
    agg_sc[...] = corr * agg_sc[...] + contrib

    # ---- finalize on the last tile: normalize, add f32 residual, store [N, Fout] once.
    @pl.when(t == pl.num_programs(0) - 1)
    def _finalize():
        inv_l = 1.0 / l_sc[...]          # exact reciprocal (single value; accuracy > speed)
        out_ref[...] = (agg_sc[...] * inv_l + res_ref[...]).astype(out_ref.dtype)


def dotgat_forward(x, edge_index, wq, wk, wr=None, br=None, *, edge_tile=512):
    """DotGATLayer.forward (eval mode).

    x: [N, Fin] f32, edge_index: [2, E] int, wq/wk: [Fin, Fout],
    wr/br: residual Linear weights (pass None for the Identity residual when Fin == Fout).
    Returns [N, Fout] f32.
    """
    n, f_in = x.shape
    f_out = wq.shape[1]
    e = edge_index.shape[1]

    # ---- hoisted projections (plain XLA matmuls; done once, outside the edge grid).
    xf = x.astype(jnp.float32)
    scale = 1.0 / math.sqrt(f_out)
    q = xf @ wq.astype(jnp.float32)              # [N, Fout]  (messages use UNSCALED Q)
    k = (xf @ wk.astype(jnp.float32)) * scale    # fold 1/sqrt(Fout) into K (logits only)
    if wr is None:
        res = xf                                  # Identity residual (Fin == Fout)
    else:
        res = xf @ wr.astype(jnp.float32) + br.astype(jnp.float32)

    if e == 0:
        return res        # degenerate graph: attention term is empty, only residual remains

    qT = q.T.astype(jnp.bfloat16)                # [Fout, N] -- MXU operands, cast exactly once
    kT = k.T.astype(jnp.bfloat16)

    # ---- pack + pad edge indices; padding uses the out-of-range node id `n`.
    e_pad = pl.cdiv(e, edge_tile) * edge_tile
    edges = jnp.pad(edge_index.astype(jnp.int32), ((0, 0), (0, e_pad - e)),
                    constant_values=n)           # [2, E_pad]
    n_tiles = e_pad // edge_tile

    kernel = functools.partial(_dotgat_kernel, num_nodes=n,
                               num_edges=e, edge_tile=edge_tile)

    # ---- explicit VMEM budget (resident blocks + scratch + in-kernel temps), with headroom.
    est_bytes = (
        2 * (2 * edge_tile * 4)          # packed edge indices (double-buffered)
        + 2 * 2 * (f_out * n * 2)        # qT, kT (bf16, resident)
        + 2 * (n * f_out * 4)            # residual (f32, resident)
        + 2 * (n * f_out * 4)            # output block
        + (n * f_out * 4)                # agg accumulator scratch
        + 2 * (n * edge_tile * 2)        # in-kernel one-hot masks (bf16)
        + 3 * (f_out * edge_tile * 4)    # q_row / k_col / msg temporaries
    )
    vmem_limit = int(min(64 << 20, max(32 << 20, 2 * est_bytes)))

    out = pl.pallas_call(
        kernel,
        out_shape=jax.ShapeDtypeStruct((n, f_out), jnp.float32),
        grid_spec=pltpu.PrefetchScalarGridSpec(
            num_scalar_prefetch=0,
            grid=(n_tiles,),
            in_specs=[
                pl.BlockSpec((2, edge_tile), lambda t: (0, t)),     # packed row/col stream
                pl.BlockSpec((f_out, n), lambda t: (0, 0)),         # Q^T (bf16, resident)
                pl.BlockSpec((f_out, n), lambda t: (0, 0)),         # K^T (bf16, resident, pre-scaled)
                pl.BlockSpec((n, f_out), lambda t: (0, 0)),         # residual (f32, resident)
            ],
            out_specs=pl.BlockSpec((n, f_out), lambda t: (0, 0)),   # [N, Fout], written once
            scratch_shapes=[
                pltpu.VMEM((n, f_out), jnp.float32),   # scatter-add accumulator
                pltpu.VMEM((1, 1), jnp.float32),       # running max m
                pltpu.VMEM((1, 1), jnp.float32),       # running denominator l
            ],
        ),
        compiler_params=pltpu.CompilerParams(
            dimension_semantics=("arbitrary",),        # edge axis = global-softmax reduction
            vmem_limit_bytes=vmem_limit,
        ),
    )(edges, qT, kT, res)
    return out


def dotgat_reference(x, edge_index, wq, wk, wr=None, br=None):
    """Pure-JAX f32 reference mirroring the PyTorch forward (eval mode)."""
    q = x @ wq
    k = x @ wk
    row, col = edge_index[0], edge_index[1]
    alpha = jnp.sum(q[row] * k[col], axis=-1) / math.sqrt(q.shape[1])
    alpha = jax.nn.softmax(alpha, axis=0)
    out = jnp.zeros_like(q).at[col].add(q[row] * alpha[:, None])
    res = x if wr is None else x @ wr + br
    return out + res


if __name__ == "__main__":
    # E spans multiple 512-wide edge tiles (with a padded tail) -> exercises the
    # multi-tile online softmax, the packed-edge stream and the padded-edge masking.
    N, E = 32, 1200
    F_IN, F_OUT = 16, 32

    key = jax.random.PRNGKey(0)
    kx, ke, kq, kk, kr, kb = jax.random.split(key, 6)

    x = jax.random.normal(kx, (N, F_IN), dtype=jnp.float32)
    edge_index = jax.random.randint(ke, (2, E), 0, N, dtype=jnp.int32)

    bq = 1.0 / math.sqrt(F_IN)
    wq = jax.random.uniform(kq, (F_IN, F_OUT), jnp.float32, -bq, bq)
    wk = jax.random.uniform(kk, (F_IN, F_OUT), jnp.float32, -bq, bq)
    wr = jax.random.uniform(kr, (F_IN, F_OUT), jnp.float32, -bq, bq)
    br = jax.random.uniform(kb, (F_OUT,), jnp.float32, -bq, bq)

    out = dotgat_forward(x, edge_index, wq, wk, wr, br)
    out = jax.block_until_ready(out)

    ref = dotgat_reference(x, edge_index, wq, wk, wr, br)
    assert out.shape == (N, F_OUT)
    # bf16 MXU operands (f32 accumulation, f32 residual) vs an f32 reference.
    assert jnp.allclose(out, ref, atol=2e-2, rtol=2e-2), "mismatch vs reference"

    print("KERNEL_OK")
</pallas_src>

<mosaic_0001>
module attributes {stable_mosaic.version = 11 : i64} {
  func.func @_dotgat_kernel(%arg0: i32, %arg1: memref<2x512xi32, #tpu.memory_space<vmem>>, %arg2: memref<32x32xbf16, #tpu.memory_space<vmem>>, %arg3: memref<32x32xbf16, #tpu.memory_space<vmem>>, %arg4: memref<32x32xf32, #tpu.memory_space<vmem>>, %arg5: memref<32x32xf32, #tpu.memory_space<vmem>>, %arg6: memref<32x32xf32, #tpu.memory_space<vmem>>, %arg7: memref<1x1xf32, #tpu.memory_space<vmem>>, %arg8: memref<1x1xf32, #tpu.memory_space<vmem>>) attributes {dimension_semantics = [#tpu.dimension_semantics<arbitrary>], iteration_bounds = array<i64: 3>, scalar_prefetch = 0 : i64, scratch_operands = 3 : i64, tpu.core_type = #tpu.core_type<tc>, window_params = [{transform_indices = @transform_0, window_bounds = array<i64: 2, 512>}, {pipeline_mode = #tpu.pipeline_mode<synchronous>, transform_indices = @transform_1, window_bounds = array<i64: 32, 32>}, {pipeline_mode = #tpu.pipeline_mode<synchronous>, transform_indices = @transform_2, window_bounds = array<i64: 32, 32>}, {pipeline_mode = #tpu.pipeline_mode<synchronous>, transform_indices = @transform_3, window_bounds = array<i64: 32, 32>}, {pipeline_mode = #tpu.pipeline_mode<synchronous>, transform_indices = @transform_4, window_bounds = array<i64: 32, 32>}]} {
    %c0_i32 = arith.constant 0 : i32
    %0 = arith.cmpi eq, %arg0, %c0_i32 : i32
    %1 = arith.extui %0 : i1 to i32
    %c0_i32_0 = arith.constant 0 : i32
    %2 = arith.cmpi ne, %1, %c0_i32_0 : i32
    scf.if %2 {
      %cst_25 = arith.constant 0.000000e+00 : f32
      %60 = vector.broadcast %cst_25 : f32 to vector<32x32xf32>
      %c0_26 = arith.constant 0 : index
      %c0_27 = arith.constant 0 : index
      %61 = vector.load %arg6[%c0_26, %c0_27] : memref<32x32xf32, #tpu.memory_space<vmem>>, vector<32x32xf32>
      tpu.vector_store %arg6[%c0_26, %c0_27], %60 {strides = array<i32>} : memref<32x32xf32, #tpu.memory_space<vmem>>, vector<32x32xf32>,
      %cst_28 = arith.constant -1.000000e+30 : f32
      %62 = vector.broadcast %cst_28 : f32 to vector<1x1xf32>
      %c0_29 = arith.constant 0 : index
      %c0_30 = arith.constant 0 : index
      %63 = vector.load %arg7[%c0_29, %c0_30] : memref<1x1xf32, #tpu.memory_space<vmem>>, vector<1x1xf32>
      tpu.vector_store %arg7[%c0_29, %c0_30], %62 {strides = array<i32>} : memref<1x1xf32, #tpu.memory_space<vmem>>, vector<1x1xf32>,
      %cst_31 = arith.constant 0.000000e+00 : f32
      %64 = vector.broadcast %cst_31 : f32 to vector<1x1xf32>
      %c0_32 = arith.constant 0 : index
      %c0_33 = arith.constant 0 : index
      %65 = vector.load %arg8[%c0_32, %c0_33] : memref<1x1xf32, #tpu.memory_space<vmem>>, vector<1x1xf32>
      tpu.vector_store %arg8[%c0_32, %c0_33], %64 {strides = array<i32>} : memref<1x1xf32, #tpu.memory_space<vmem>>, vector<1x1xf32>,
    } else {
    }
    %c0 = arith.constant 0 : index
    %c0_1 = arith.constant 0 : index
    %3 = vector.load %arg1[%c0, %c0_1] : memref<2x512xi32, #tpu.memory_space<vmem>>, vector<2x512xi32>
    %4 = vector.extract_strided_slice %3 {offsets = [0, 0], sizes = [1, 512], strides = [1, 1]} : vector<2x512xi32> to vector<1x512xi32>
    %5 = vector.extract_strided_slice %3 {offsets = [1, 0], sizes = [1, 512], strides = [1, 1]} : vector<2x512xi32> to vector<1x512xi32>
    %6 = tpu.iota {dimensions = array<i32: 0>} : vector<32x512xi32>
    %7 = vector.broadcast %4 : vector<1x512xi32> to vector<32x512xi32>
    %8 = arith.cmpi eq, %6, %7 : vector<32x512xi32>
    %9 = arith.extui %8 : vector<32x512xi1> to vector<32x512xi32>
    %10 = arith.sitofp %9 : vector<32x512xi32> to vector<32x512xf32>
    %11 = arith.truncf %10 : vector<32x512xf32> to vector<32x512xbf16>
    %12 = vector.broadcast %5 : vector<1x512xi32> to vector<32x512xi32>
    %13 = arith.cmpi eq, %6, %12 : vector<32x512xi32>
    %14 = arith.extui %13 : vector<32x512xi1> to vector<32x512xi32>
    %15 = arith.sitofp %14 : vector<32x512xi32> to vector<32x512xf32>
    %16 = arith.truncf %15 : vector<32x512xf32> to vector<32x512xbf16>
    %c0_2 = arith.constant 0 : index
    %c0_3 = arith.constant 0 : index
    %17 = vector.load %arg2[%c0_2, %c0_3] : memref<32x32xbf16, #tpu.memory_space<vmem>>, vector<32x32xbf16>
    %cst = arith.constant dense<0.000000e+00> : vector<32x512xf32>
    %18 = tpu.matmul %17, %11, %cst {dimension_numbers = #tpu.dot_dimension_numbers<[1], [0], [0], [1], [0, 0, 1, 1], [], []>} : vector<32x32xbf16>, vector<32x512xbf16>, vector<32x512xf32> -> vector<32x512xf32>
    %c0_4 = arith.constant 0 : index
    %c0_5 = arith.constant 0 : index
    %19 = vector.load %arg3[%c0_4, %c0_5] : memref<32x32xbf16, #tpu.memory_space<vmem>>, vector<32x32xbf16>
    %cst_6 = arith.constant dense<0.000000e+00> : vector<32x512xf32>
    %20 = tpu.matmul %19, %16, %cst_6 {dimension_numbers = #tpu.dot_dimension_numbers<[1], [0], [0], [1], [0, 0, 1, 1], [], []>} : vector<32x32xbf16>, vector<32x512xbf16>, vector<32x512xf32> -> vector<32x512xf32>
    %21 = arith.mulf %18, %20 : vector<32x512xf32>
    %cst_7 = arith.constant dense<0.000000e+00> : vector<512xf32>
    %22 = vector.multi_reduction <add>, %21, %cst_7 [0] : vector<32x512xf32> to vector<512xf32>
    %23 = vector.shape_cast %22 : vector<512xf32> to vector<1x512xf32>
    %c512_i32 = arith.constant 512 : i32
    %24 = arith.muli %arg0, %c512_i32 : i32
    %25 = tpu.iota {dimensions = array<i32: 1>} : vector<1x512xi32>
    %26 = vector.broadcast %24 : i32 to vector<1x512xi32>
    %27 = arith.addi %26, %25 : vector<1x512xi32>
    %c1200_i32 = arith.constant 1200 : i32
    %28 = vector.broadcast %c1200_i32 : i32 to vector<1x512xi32>
    %29 = arith.cmpi slt, %27, %28 : vector<1x512xi32>
    %cst_8 = arith.constant -1.000000e+30 : f32
    %30 = vector.broadcast %cst_8 : f32 to vector<1x512xf32>
    %31 = arith.select %29, %23, %30 : vector<1x512xi1>, vector<1x512xf32>
    %c0_9 = arith.constant 0 : index
    %c0_10 = arith.constant 0 : index
    %32 = vector.load %arg7[%c0_9, %c0_10] : memref<1x1xf32, #tpu.memory_space<vmem>>, vector<1x1xf32>
    %cst_11 = arith.constant dense<0xFF800000> : vector<1xf32>
    %33 = vector.multi_reduction <maximumf>, %31, %cst_11 [1] : vector<1x512xf32> to vector<1xf32>
    %34 = vector.shape_cast %33 : vector<1xf32> to vector<1x1xf32>
    %35 = arith.maximumf %32, %34 : vector<1x1xf32>
    %36 = arith.subf %32, %35 : vector<1x1xf32>
    %37 = math.exp %36 : vector<1x1xf32>
    %38 = vector.broadcast %35 : vector<1x1xf32> to vector<1x512xf32>
    %39 = arith.subf %31, %38 : vector<1x512xf32>
    %40 = math.exp %39 : vector<1x512xf32>
    %c0_12 = arith.constant 0 : index
    %c0_13 = arith.constant 0 : index
    %41 = vector.load %arg8[%c0_12, %c0_13] : memref<1x1xf32, #tpu.memory_space<vmem>>, vector<1x1xf32>
    %42 = arith.mulf %37, %41 : vector<1x1xf32>
    %cst_14 = arith.constant dense<0.000000e+00> : vector<1xf32>
    %43 = vector.multi_reduction <add>, %40, %cst_14 [1] : vector<1x512xf32> to vector<1xf32>
    %44 = vector.shape_cast %43 : vector<1xf32> to vector<1x1xf32>
    %45 = arith.addf %42, %44 : vector<1x1xf32>
    %c0_15 = arith.constant 0 : index
    %c0_16 = arith.constant 0 : index
    %46 = vector.load %arg8[%c0_15, %c0_16] : memref<1x1xf32, #tpu.memory_space<vmem>>, vector<1x1xf32>
    tpu.vector_store %arg8[%c0_15, %c0_16], %45 {strides = array<i32>} : memref<1x1xf32, #tpu.memory_space<vmem>>, vector<1x1xf32>,
    %c0_17 = arith.constant 0 : index
    %c0_18 = arith.constant 0 : index
    %47 = vector.load %arg7[%c0_17, %c0_18] : memref<1x1xf32, #tpu.memory_space<vmem>>, vector<1x1xf32>
    tpu.vector_store %arg7[%c0_17, %c0_18], %35 {strides = array<i32>} : memref<1x1xf32, #tpu.memory_space<vmem>>, vector<1x1xf32>,
    %48 = vector.broadcast %40 : vector<1x512xf32> to vector<32x512xf32>
    %49 = arith.mulf %18, %48 : vector<32x512xf32>
    %50 = arith.truncf %49 : vector<32x512xf32> to vector<32x512xbf16>
    %cst_19 = arith.constant dense<0.000000e+00> : vector<32x32xf32>
    %51 = tpu.matmul %16, %50, %cst_19 {dimension_numbers = #tpu.dot_dimension_numbers<[1], [1], [0], [0], [0, 0, 1, 0], [], []>} : vector<32x512xbf16>, vector<32x512xbf16>, vector<32x32xf32> -> vector<32x32xf32>
    %c0_20 = arith.constant 0 : index
    %c0_21 = arith.constant 0 : index
    %52 = vector.load %arg6[%c0_20, %c0_21] : memref<32x32xf32, #tpu.memory_space<vmem>>, vector<32x32xf32>
    %53 = vector.broadcast %37 : vector<1x1xf32> to vector<32x32xf32>
    %54 = arith.mulf %53, %52 : vector<32x32xf32>
    %55 = arith.addf %54, %51 : vector<32x32xf32>
    %c0_22 = arith.constant 0 : index
    %c0_23 = arith.constant 0 : index
    %56 = vector.load %arg6[%c0_22, %c0_23] : memref<32x32xf32, #tpu.memory_space<vmem>>, vector<32x32xf32>
    tpu.vector_store %arg6[%c0_22, %c0_23], %55 {strides = array<i32>} : memref<32x32xf32, #tpu.memory_space<vmem>>, vector<32x32xf32>,
    %c2_i32 = arith.constant 2 : i32
    %57 = arith.cmpi eq, %arg0, %c2_i32 : i32
    %58 = arith.extui %57 : i1 to i32
    %c0_i32_24 = arith.constant 0 : i32
    %59 = arith.cmpi ne, %58, %c0_i32_24 : i32
    scf.if %59 {
      %c0_25 = arith.constant 0 : index
      %c0_26 = arith.constant 0 : index
      %60 = vector.load %arg8[%c0_25, %c0_26] : memref<1x1xf32, #tpu.memory_space<vmem>>, vector<1x1xf32>
      %cst_27 = arith.constant 1.000000e+00 : f32
      %61 = vector.broadcast %cst_27 : f32 to vector<1x1xf32>
      %62 = arith.divf %61, %60 : vector<1x1xf32>
      %c0_28 = arith.constant 0 : index
      %c0_29 = arith.constant 0 : index
      %63 = vector.load %arg6[%c0_28, %c0_29] : memref<32x32xf32, #tpu.memory_space<vmem>>, vector<32x32xf32>
      %64 = vector.broadcast %62 : vector<1x1xf32> to vector<32x32xf32>
      %65 = arith.mulf %63, %64 : vector<32x32xf32>
      %c0_30 = arith.constant 0 : index
      %c0_31 = arith.constant 0 : index
      %66 = vector.load %arg4[%c0_30, %c0_31] : memref<32x32xf32, #tpu.memory_space<vmem>>, vector<32x32xf32>
      %67 = arith.addf %65, %66 : vector<32x32xf32>
      %c0_32 = arith.constant 0 : index
      %c0_33 = arith.constant 0 : index
      %68 = vector.load %arg5[%c0_32, %c0_33] : memref<32x32xf32, #tpu.memory_space<vmem>>, vector<32x32xf32>
      tpu.vector_store %arg5[%c0_32, %c0_33], %67 {strides = array<i32>} : memref<32x32xf32, #tpu.memory_space<vmem>>, vector<32x32xf32>,
    } else {
    }
    return
  }
  func.func @transform_0(%arg0: i32) -> (i32, i32) {
    %c0_i32 = arith.constant 0 : i32
    %c0_i32_0 = arith.constant 0 : i32
    return %c0_i32, %arg0 : i32, i32
  }
  func.func @transform_1(%arg0: i32) -> (i32, i32) {
    %c0_i32 = arith.constant 0 : i32
    %c0_i32_0 = arith.constant 0 : i32
    %c0_i32_1 = arith.constant 0 : i32
    return %c0_i32, %c0_i32_0 : i32, i32
  }
  func.func @transform_2(%arg0: i32) -> (i32, i32) {
    %c0_i32 = arith.constant 0 : i32
    %c0_i32_0 = arith.constant 0 : i32
    %c0_i32_1 = arith.constant 0 : i32
    return %c0_i32, %c0_i32_0 : i32, i32
  }
  func.func @transform_3(%arg0: i32) -> (i32, i32) {
    %c0_i32 = arith.constant 0 : i32
    %c0_i32_0 = arith.constant 0 : i32
    %c0_i32_1 = arith.constant 0 : i32
    return %c0_i32, %c0_i32_0 : i32, i32
  }
  func.func @transform_4(%arg0: i32) -> (i32, i32) {
    %c0_i32 = arith.constant 0 : i32
    %c0_i32_0 = arith.constant 0 : i32
    %c0_i32_1 = arith.constant 0 : i32
    return %c0_i32, %c0_i32_0 : i32, i32
  }
}

</mosaic_0001>

<bundles_post_ra>
// kernel: tpu_custom_call.1
= control target key start
LH: loop header
LB: loop body
LE: loop exit
PB: predicated region body
PF: predicated region fallthrough
CT: control target
= control target key end

     0   :  { %9 = vsyncpa [#allocation6], 0  ;;  %s2001_s0 = inlined_call_operand.hbm [shape: s32[2,1536], index: 0, kind: input, shape index: {}]   ;;  %s2002_s1 = inlined_call_operand.hbm [shape: bf16[32,32], index: 1, kind: input, shape index: {}]   ;;  %s2003_s2 = inlined_call_operand.hbm [shape: bf16[32,32], index: 2, kind: input, shape index: {}]   ;;  %s2004_s3 = inlined_call_operand.hbm [shape: f32[32,32], index: 3, kind: input, shape index: {}]   ;;  %s2005_s4 = inlined_call_operand.hbm [shape: f32[32,32], index: 4, kind: output, shape index: {}]  }
   0x1   :  { %11 = vsyncpa [#allocation6 + $0x1], 0 }
   0x2   :  { %12 = vsyncpa [#allocation9], 0 }
   0x3   :  { %13 = vsyncpa [#allocation12], 0 }
   0x4   :  { %14 = vsyncpa [#allocation7], 0  ;;  %s1529_s15 = smov 0   ;;  %s1531_s16 = smov 0  }
   0x5   :  { %s1533_s17 = smov 0   ;;  %s1535_s18 = smov 0  }
   0x6 LB: > { %s1548_s19 = sadd.s32 4294967295, %s1486_s18   ;;  %p40_p0 = scmp.ne.s32.totalorder %s1478_s16, %s1474_s15  ;;  %s1486_s18 = sphi %s1535_s18, %s2040_s18   ;;  %s1482_s17 = sphi %s1533_s17, %s2039_s17   ;;  %s1478_s16 = sphi %s1531_s16, %s2038_s16   ;;  %s1474_s15 = sphi %s1529_s15, %s2037_s15  }
   0x7   : > { %p2006_p1 = scmp.eq.s32.totalorder %s1548_s19, 0  ;;  %p1080_p2 = scmp.ge.s32.totalorder %s1486_s18, 1 }
   0x8   : > { %p135_p3 = scmp.lt.s32.totalorder %s1486_s18, 4  ;;  %s1488_s22 = smov [#allocation8]  }
   0x9   : > { %p1557_p5 = por %p2006_p1, %p40_p0  ;;  %s147_s23 = sshll.u32 %s1488_s22, 4  ;;  %s1565_s23 = int_to_ptr.vmem [resolvable:$true] %s147_s23 }
   0xa   : > { %p1561_p6 = pnand %p1080_p2, %p135_p3  ;;  %s1489_s25 = smov [#allocation10]  }
   0xb   : > { %s2009_s20 = scalar_select %p1557_p5, 1, 0 }
   0xc   : > { %s2010_s21 = scalar_select %p1561_p6, 1, 0 }
   0xd   : > { %p1211_p7 = pneg %p1561_p6  ;;  %s160_s26 = sshll.u32 %s1489_s25, 4  ;;  %s1575_s26 = int_to_ptr.vmem [resolvable:$true] %s160_s26 }
   0xe   : > { %s1490_s27 = smov [#allocation11]   ;;  %s1300_s5 = scalar_lea.hbm %s2002_s1, 256 }
   0xf   : > { %p1571_p8 = pnand %p1211_p7, %p2006_p1  ;;  %s1577_s28 = sshll.u32 %s1490_s27, 4  ;;  %s174_s28 = int_to_ptr.vmem [resolvable:$true] %s1577_s28 }
  0x10   : > { %p1301_p9 = scmp.ne.s32.totalorder %s2002_s1, %s1300_s5  ;;  %p1307_p13 = scmp.lt.u32.totalorder %s1300_s5, %s2002_s1 }
  0x11   : > { %p1587_p10 = pneg %p1571_p8 }
  0x13   : > { %p1303_p11 = pnand %p1587_p10, %p1301_p9 }
  0x15   : > { %p1304_p12 = pneg %p1303_p11 }
  0x17   : > { %p1309_p0 = pnand %p1307_p13, %p1304_p12 }
  0x19   : > { %1312 = shalt.err (!%p1309_p0)
}
  0x1a   : > { %s1313_s11 = scalar_lea.vmem %s1565_s23, 256  ;;  %p1321_p4 = scmp.lt.s32.totalorder %s1565_s23, %s1565_s23 }
  0x1b   : > { %p1314_p2 = scmp.ne.s32.totalorder %s1565_s23, %s1313_s11  ;;  %p1322_p1 = scmp.lt.s32.totalorder %s1313_s11, %s1313_s11 }
  0x1d   : > { %p1316_p3 = pnand %p1314_p2, %p1587_p10  ;;  %p1323_p9 = por %p1322_p1, %p1321_p4 }
  0x1f   : > { %p1317_p7 = pneg %p1316_p3 }
  0x21   : > { %p1324_p11 = pnand %p1323_p9, %p1317_p7 }
  0x23   : > { %1327 = shalt.err (!%p1324_p11)
}
  0x24   : > { %s1491_s12 = smov 64   ;;  %s1492_s13 = smov 4  }
  0x25   : > { %1214 = dma.hbm_to_vmem [thread:$0]  (!%p1571_p8), %s2002_s1, 256, %s1565_s23, [#allocation9], %s1491_s12, %s1491_s12, %s1492_s13  }
  0x26   : > { %s1328_s27 = scalar_lea.hbm %s2003_s2, 256 }
  0x27   : > { %p1329_p1 = scmp.ne.s32.totalorder %s2003_s2, %s1328_s27  ;;  %p1335_p13 = scmp.lt.u32.totalorder %s1328_s27, %s2003_s2 }
  0x29   : > { %p1331_p4 = pnand %p1329_p1, %p1587_p10 }
  0x2b   : > { %p1332_p12 = pneg %p1331_p4 }
  0x2d   : > { %p1337_p0 = pnand %p1335_p13, %p1332_p12 }
  0x2f   : > { %1340 = shalt.err (!%p1337_p0)
}
  0x30   : > { %s1341_s23 = scalar_lea.vmem %s1575_s26, 256  ;;  %p1349_p9 = scmp.lt.s32.totalorder %s1575_s26, %s1575_s26 }
  0x31   : > { %p1342_p2 = scmp.ne.s32.totalorder %s1575_s26, %s1341_s23  ;;  %p1350_p11 = scmp.lt.s32.totalorder %s1341_s23, %s1341_s23 }
  0x33   : > { %p1344_p3 = pnand %p1342_p2, %p1587_p10  ;;  %p1351_p1 = por %p1350_p11, %p1349_p9 }
  0x35   : > { %p1345_p7 = pneg %p1344_p3 }
  0x37   : > { %p1352_p4 = pnand %p1351_p1, %p1345_p7 }
  0x39   : > { %1355 = shalt.err (!%p1352_p4)
}
  0x3a   : > { %1217 = dma.hbm_to_vmem [thread:$0]  (!%p1571_p8), %s2003_s2, 256, %s1575_s26, [#allocation9], %s1491_s12, %s1491_s12, %s1492_s13  }
  0x3b   : > { %s1356_s14 = scalar_lea.hbm %s2004_s3, 512 }
  0x3c   : > { %p1357_p12 = scmp.ne.s32.totalorder %s2004_s3, %s1356_s14  ;;  %p1363_p2 = scmp.lt.u32.totalorder %s1356_s14, %s2004_s3 }
  0x3e   : > { %p1359_p13 = pnand %p1357_p12, %p1587_p10 }
  0x40   : > { %p1360_p0 = pneg %p1359_p13 }
  0x42   : > { %p1365_p3 = pnand %p1363_p2, %p1360_p0 }
  0x44   : > { %1368 = shalt.err (!%p1365_p3)
}
  0x45   : > { %s1369_s29 = scalar_lea.vmem %s174_s28, 512  ;;  %p1377_p1 = scmp.lt.s32.totalorder %s174_s28, %s174_s28 }
  0x46   : > { %p1370_p7 = scmp.ne.s32.totalorder %s174_s28, %s1369_s29  ;;  %p1378_p4 = scmp.lt.s32.totalorder %s1369_s29, %s1369_s29 }
  0x48   : > { %p1372_p9 = pnand %p1370_p7, %p1587_p10  ;;  %p1379_p5 = por %p1378_p4, %p1377_p1 }
  0x4a   : > { %p1373_p11 = pneg %p1372_p9 }
  0x4c   : > { %p1380_p6 = pnand %p1379_p5, %p1373_p11 }
  0x4e   : > { %1383 = shalt.err (!%p1380_p6)
}
  0x4f   : > { %s1493_s26 = smov 128   ;;  %s1494_s8 = smov 8  }
  0x50   : > { %1220 = dma.hbm_to_vmem [thread:$0]  (!%p1571_p8), %s2004_s3, 512, %s174_s28, [#allocation12], %s1493_s26, %s1493_s26, %s1494_s8  }
  0x51   : > { %s1651_s30 = sadd.s32 1, %s1486_s18   ;;  %s27_s6 = sadd.s32 1, %s1482_s17 }
  0x52   : > { %s24_s5 = ssub.s32 %s1486_s18, %s1651_s30  ;;  %p34_p6 = scmp.ne.s32.totalorder %s1482_s17, %s1478_s16 }
  0x53   : > { %p25_p5 = scmp.eq.s32.totalorder %s24_s5, 0  ;;  %p35_p10 = scmp.eq.s32.totalorder %s1486_s18, 0 }
  0x54   : > { %p1228_p12 = scmp.lt.s32.totalorder %s1486_s18, 3  ;;  %s187_s7 = sand.u32 1, %s1482_s17  }
  0x55   : > { %s1661_s23 = scalar_select %p25_p5, %s1482_s17, %s27_s6  }
  0x56   : > { %p36_p13 = por %p35_p10, %p34_p6  ;;  %s1085_s9 = sshll.u32 %s187_s7, 3 }
  0x57   : > { %s1192_s10 = sshll.u32 %s1486_s18, 7  ;;  %s191_s28 = scalar_lea.vmem [#allocation5], %s1085_s9 }
  0x58   : > { %s1668_s14 = scalar_lea.hbm %s2001_s0, %s1192_s10  ;;  %s199_s15 = sshll.u32 %s191_s28, 4  ;;  %s1670_s15 = int_to_ptr.vmem [resolvable:$true] %s199_s15 }
  0x59   : > { %p1672_p8 = pnand %p1228_p12, %p36_p13  ;;  %s188_s18 = scalar_lea.sflag [#allocation6], %s187_s7 }
  0x5a   : > { %s1384_s25 = scalar_lea.hbm %s1668_s14, 128  ;;  %s1389_s26 = scalar_lea.hbm %s2001_s0, 384 }
  0x5b   : > { %p1385_p0 = scmp.ne.s32.totalorder %s1668_s14, %s1384_s25  ;;  %p1386_p2 = pneg %p1672_p8 }
  0x5c   : > { %p1390_p9 = scmp.lt.u32.totalorder %s1668_s14, %s2001_s0  ;;  %p1391_p11 = scmp.lt.u32.totalorder %s1389_s26, %s1384_s25 }
  0x5d   : > { %p1387_p3 = pnand %p1386_p2, %p1385_p0  ;;  %p1393_p4 = scmp.lt.u32.totalorder %s1384_s25, %s1668_s14 }
  0x5e   : > { %p1392_p1 = por %p1391_p11, %p1390_p9 }
  0x5f   : > { %p1388_p7 = pneg %p1387_p3 }
  0x60   : > { %p1394_p5 = por %p1393_p4, %p1392_p1 }
  0x62   : > { %p1395_p6 = pnand %p1394_p5, %p1388_p7 }
  0x64   : > { %1398 = shalt.err (!%p1395_p6)
}
  0x65   : > { %s1399_s13 = scalar_lea.vmem %s1670_s15, 128  ;;  %s1495_s5 = smov [#allocation5]  }
  0x66   : > { %p1400_p10 = scmp.ne.s32.totalorder %s1670_s15, %s1399_s13  ;;  %s1404_s6 = sshll.u32 %s1495_s5, 4  ;;  %s1405_s6 = int_to_ptr.vmem [resolvable:$false] %s1404_s6 }
  0x67   : > { %s1406_s7 = scalar_lea.vmem %s1405_s6, 256  ;;  %p1407_p0 = scmp.lt.s32.totalorder %s1670_s15, %s1405_s6 }
  0x68   : > { %p1402_p12 = pnand %p1400_p10, %p1386_p2  ;;  %p1408_p3 = scmp.lt.s32.totalorder %s1406_s7, %s1399_s13 }
  0x6a   : > { %p1403_p13 = pneg %p1402_p12  ;;  %p1409_p9 = por %p1408_p3, %p1407_p0 }
  0x6c   : > { %p1410_p11 = pnand %p1409_p9, %p1403_p13 }
  0x6e   : > { %1413 = shalt.err (!%p1410_p11)
}
  0x6f   : > { %1224 = dma.hbm_to_vmem [thread:$0]  (!%p1672_p8), %s1668_s14, 128, %s1670_s15, %s188_s18  }
  0x70   : > { %p2014_p7 = scmp.ne.s32.totalorder %s2010_s21, 0 }
  0x71   : > { %s210_s9 = sand.u32 (!%p2014_p7), 1, %s1478_s16   ;;  %p2015_p2 = scmp.ne.s32.totalorder (!%p2014_p7), %s2009_s20, 0 }
  0x72   : > { %208 = sbr.rel (%p2014_p7) target bundleno = 1041 (0x411), region = 36  ;;  %s1089_s10 = sshll.u32 (!%p2014_p7), %s210_s9, 3 }
  0x73   : > { %s211_s24 = scalar_lea.sflag (!%p2014_p7), [#allocation6], %s210_s9  ;;  %s214_s11 = scalar_lea.vmem (!%p2014_p7), [#allocation5], %s1089_s10 }
  0x79   : > { %1457 = dma.done.wait (%p2015_p2), %s211_s24, 128  }
  0x7a   : > { %1459 = vsyncadd (%p2015_p2), %s211_s24, 4294967168  ;;  %p2016_p1 = scmp.eq.s32.totalorder %s1548_s19, 0 }
  0x7c   : > { %1461 = dma.done.wait (%p2016_p1), [#allocation9], 512   ;;  %p2017_p4 = pmov %p2016_p1 }
  0x7d   : > { %p2018_p8 = pmov %p2016_p1 }
  0x7e   : > { %1463 = vsyncadd (%p2017_p4), [#allocation9], 4294966784 }
  0x7f   : > { %1465 = dma.done.wait (%p2018_p8), [#allocation12], 512   ;;  %p2019_p5 = pmov %p2016_p1 }
  0x80   : > { %p2020_p6 = scmp.ne.s32.totalorder %s1548_s19, 0 }
  0x81   : > { %1467 = vsyncadd (%p2019_p5), [#allocation12], 4294966784  ;;  %vm252_vm0 = vcmask (!%p2020_p6), 261120   ;;  %vm257_vm1 = vcmask (!%p2020_p6), 0   ;;  %v1496_v0 = vmov (!%p2020_p6), 0.0  }
  0x82   : > { %251 = sbr.rel (%p2020_p6) target bundleno = 137 (0x89), region = 56  ;;  %253 = vst.msk [vmem:[#allocation2] sm:$0xff] (!%p2020_p6), %vm252_vm0, %v1496_v0  ;;  %254 = vst.msk [vmem:[#allocation2 + $0x8] sm:$0xff] (!%p2020_p6), %vm252_vm0, %v1496_v0  ;;  %v1497_v1 = vmov (!%p2020_p6), -1e+30  }
  0x83   : > { %255 = vst.msk [vmem:[#allocation2 + $0x10] sm:$0xff] (!%p2020_p6), %vm252_vm0, %v1496_v0  ;;  %256 = vst.msk [vmem:[#allocation2 + $0x18] sm:$0xff] (!%p2020_p6), %vm252_vm0, %v1496_v0 }
  0x84   : > { %258 = vst.msk [vmem:[#allocation3] sm:$0x1] (!%p2020_p6), %vm257_vm1, %v1497_v1  ;;  %259 = vst.msk [vmem:[#allocation4] sm:$0x1] (!%p2020_p6), %vm257_vm1, %v1496_v0 }
  0x89 PF: > { %v261_v2 = vlaneseq  ;;  %v1498_v3 = vmov 0   ;;  %v260_v4 = vld [vmem:[%s214_s11] sm:$0xff]  ;;  %v1499_v29 = vmov 1.0|1.0   ;;  %v1283_v34 = vld [vmem:[#allocation8] sm:$0xff]   ;;  %v1284_v41 = vld [vmem:[#allocation8 + $0x8] sm:$0xff]  }
  0x8a   : > { %495 = vmatprep.mubr.bf16.mxu0 %v1498_v3  ;;  %548 = vmatprep.mubr.bf16.mxu1 %v1498_v3  ;;  %v1285_v44 = vld [vmem:[#allocation10] sm:$0xff]   ;;  %v1286_v45 = vld [vmem:[#allocation10 + $0x8] sm:$0xff]   ;;  %s1170_s20 = sshll.u32 %s1548_s19, 9  ;;  %p1187_p10 = scmp.ne.s32.totalorder %s1548_s19, 2 }
  0x8b   : > { %v1721_v5 = vshrl.u32 %v261_v2, 7  ;;  %1281 = vset.pattern.permute.xlu0 %v1498_v3  ;;  %1282 = vset.pattern.permute.xlu1 %v1498_v3  ;;  %v797_v37 = vld [vmem:[#allocation4] sm:$0x1] }
  0x8d   : > { %v1726_v6 = vsub.s32 0, %v1721_v5  ;;  %v272_v7 = vsub.s32 2, %v1721_v5  ;;  %v280_v8 = vsub.s32 6, %v1721_v5  ;;  %v1731_v9 = vadd.s32 8, %v1721_v5 }
  0x8e   : > { %v276_v10 = vsub.s32 4, %v1721_v5  ;;  %v1735_v11 = vadd.s32 16, %v1721_v5  ;;  %v356_v12 = vsub.s32 1, %v1721_v5  ;;  %v360_v16 = vsub.s32 3, %v1721_v5 }
  0x8f   : > { %v273_v13 = vrot.slane %v260_v4, %v272_v7  ;;  %v281_v14 = vrot.slane %v260_v4, %v280_v8  ;;  %v269_v15 = vrot.slane %v260_v4, %v1726_v6  ;;  %v1741_v18 = vadd.s32 24, %v1721_v5 }
  0x90   : > { %v277_v17 = vrot.slane %v260_v4, %v276_v10  ;;  %v368_v19 = vsub.s32 7, %v1721_v5  ;;  %v364_v20 = vsub.s32 5, %v1721_v5  ;;  %v357_v24 = vrot.slane %v260_v4, %v356_v12 }
  0x91   : > { %v289_v21 = vrot.slane %v273_v13, %v1726_v6  ;;  %v297_v22 = vrot.slane %v281_v14, %v1726_v6  ;;  %v285_v23 = vrot.slane %v269_v15, %v1726_v6  ;;  %v361_v26 = vrot.slane %v260_v4, %v360_v16 }
  0x92   : > { %v293_v25 = vrot.slane %v277_v17, %v1726_v6  ;;  %v369_v27 = vrot.slane %v260_v4, %v368_v19  ;;  %v365_v28 = vrot.slane %v260_v4, %v364_v20  ;;  %v373_v30 = vrot.slane %v357_v24, %v356_v12 }
  0x93   : > { %vm299_vm2 = vcmp.eq.s32.totalorder %v1721_v5, %v289_v21  ;;  %vm303_vm3 = vcmp.eq.s32.totalorder %v1731_v9, %v289_v21  ;;  %vm301_vm4 = vcmp.eq.s32.totalorder %v1721_v5, %v297_v22  ;;  %vm305_vm5 = vcmp.eq.s32.totalorder %v1731_v9, %v297_v22 }
  0x94   : > { %vm1128_vm6 = vmpackc.low %vm303_vm3, %vm299_vm2  ;;  %vm298_vm7 = vcmp.eq.s32.totalorder %v1721_v5, %v285_v23  ;;  %vm302_vm8 = vcmp.eq.s32.totalorder %v1731_v9, %v285_v23  ;;  %vm300_vm9 = vcmp.eq.s32.totalorder %v1721_v5, %v293_v25  ;;  %vm304_vm10 = vcmp.eq.s32.totalorder %v1731_v9, %v293_v25 }
  0x95   : > { %1129 = vmatprep.subr.msk.bf16.mxu0 %vm1128_vm6, %v1499_v29  ;;  %vm1138_vm11 = vmpackc.low %vm305_vm5, %vm301_vm4  ;;  %vm307_vm12 = vcmp.eq.s32.totalorder %v1735_v11, %v289_v21  ;;  %vm311_vm13 = vcmp.eq.s32.totalorder %v1741_v18, %v289_v21  ;;  %vm309_vm15 = vcmp.eq.s32.totalorder %v1735_v11, %v297_v22  ;;  %vm313_vm0 = vcmp.eq.s32.totalorder %v1741_v18, %v297_v22 }
  0x96   : > { %1139 = vmatprep.subr.msk.bf16.mxu1 %vm1138_vm11, %v1499_v29  ;;  %vm1130_vm14 = vmpackc.low %vm302_vm8, %vm298_vm7  ;;  %vm306_vm2 = vcmp.eq.s32.totalorder %v1735_v11, %v285_v23  ;;  %vm310_vm3 = vcmp.eq.s32.totalorder %v1741_v18, %v285_v23  ;;  %v377_v31 = vrot.slane %v361_v26, %v356_v12  ;;  %v385_v32 = vrot.slane %v369_v27, %v356_v12 }
  0x97   : > { %1131 = vmatpush1.bf16.msk.msra.mxu0 %vm1130_vm14, %v1499_v29  ;;  %vm1140_vm1 = vmpackc.low %vm304_vm10, %vm300_vm9  ;;  %vm308_vm5 = vcmp.eq.s32.totalorder %v1735_v11, %v293_v25  ;;  %vm312_vm6 = vcmp.eq.s32.totalorder %v1741_v18, %v293_v25  ;;  %v381_v33 = vrot.slane %v365_v28, %v356_v12  ;;  %vm456_vm14 = vcmask 261120  }
  0x98   : > { %1141 = vmatpush1.bf16.msk.msra.mxu1 %vm1140_vm1, %v1499_v29  ;;  %vm1132_vm4 = vmpackc.low %vm311_vm13, %vm307_vm12  ;;  %vm387_vm8 = vcmp.eq.s32.totalorder %v1721_v5, %v377_v31  ;;  %vm391_vm9 = vcmp.eq.s32.totalorder %v1731_v9, %v377_v31  ;;  %vm389_vm11 = vcmp.eq.s32.totalorder %v1721_v5, %v385_v32  ;;  %vm393_vm12 = vcmp.eq.s32.totalorder %v1731_v9, %v385_v32 }
  0x99   : > { %1133 = vmatprep.subr.msk.bf16.mxu0 %vm1132_vm4, %v1499_v29  ;;  %vm1142_vm7 = vmpackc.low %vm313_vm0, %vm309_vm15  ;;  %vm386_vm1 = vcmp.eq.s32.totalorder %v1721_v5, %v373_v30  ;;  %vm390_vm15 = vcmp.eq.s32.totalorder %v1731_v9, %v373_v30 }
  0x9a   : > { %1143 = vmatprep.subr.msk.bf16.mxu1 %vm1142_vm7, %v1499_v29  ;;  %vm1134_vm10 = vmpackc.low %vm310_vm3, %vm306_vm2  ;;  %vm388_vm2 = vcmp.eq.s32.totalorder %v1721_v5, %v381_v33  ;;  %vm392_vm3 = vcmp.eq.s32.totalorder %v1731_v9, %v381_v33 }
  0x9b   : > { %1135 = vmatpush1.bf16.msk.msra.mxu0 %vm1134_vm10, %v1499_v29  ;;  %vm1144_vm13 = vmpackc.low %vm312_vm6, %vm308_vm5  ;;  %vm395_vm5 = vcmp.eq.s32.totalorder %v1735_v11, %v377_v31  ;;  %vm399_vm6 = vcmp.eq.s32.totalorder %v1741_v18, %v377_v31 }
  0x9c   : > { %1145 = vmatpush1.bf16.msk.msra.mxu1 %vm1144_vm13, %v1499_v29  ;;  %vm1781_vm0 = vmpackc.low %vm391_vm9, %vm387_vm8  ;;  %vm397_vm8 = vcmp.eq.s32.totalorder %v1735_v11, %v385_v32  ;;  %vm401_vm9 = vcmp.eq.s32.totalorder %v1741_v18, %v385_v32 }
  0x9d   : > { %1151 = vmatprep.subr.msk.bf16.mxu0 %vm1781_vm0, %v1499_v29  ;;  %vm1790_vm4 = vmpackc.low %vm393_vm12, %vm389_vm11  ;;  %vm394_vm11 = vcmp.eq.s32.totalorder %v1735_v11, %v373_v30  ;;  %vm398_vm12 = vcmp.eq.s32.totalorder %v1741_v18, %v373_v30 }
  0x9e   : > { %1136 = vmatmul.mubr.msk.bf16.vlgmr.msra.gmra.mrb[0].mxu0 %vm456_vm14, %v1283_v34  ;;  %1161 = vmatprep.subr.msk.bf16.mxu1 %vm1790_vm4, %v1499_v29  ;;  %vm1800_vm7 = vmpackc.low %vm390_vm15, %vm386_vm1  ;;  %vm396_vm1 = vcmp.eq.s32.totalorder %v1735_v11, %v381_v33  ;;  %vm400_vm15 = vcmp.eq.s32.totalorder %v1741_v18, %v381_v33 }
  0x9f   : > { %1146 = vmatmul.mubr.msk.bf16.vlgmr.msra.gmra.mrb[0].mxu1 %vm456_vm14, %v1283_v34  ;;  %1153 = vmatpush1.bf16.msk.msra.mxu0 %vm1800_vm7, %v1499_v29  ;;  %vm1810_vm10 = vmpackc.low %vm392_vm3, %vm388_vm2  ;;  %v749_v34 = vand.u32 127, %v261_v2 }
  0xa0   : > { %1163 = vmatpush1.bf16.msk.msra.mxu1 %vm1810_vm10, %v1499_v29  ;;  %505 = vmatprep.mubr.bf16.mxu0 %v1498_v3  ;;  %vm1820_vm13 = vmpackc.low %vm399_vm6, %vm395_vm5 }
  0xa1   : > { %558 = vmatprep.mubr.bf16.mxu1 %v1498_v3  ;;  %1155 = vmatprep.subr.msk.bf16.mxu0 %vm1820_vm13, %v1499_v29  ;;  %vm1830_vm2 = vmpackc.low %vm401_vm9, %vm397_vm8  ;;  %vm805_vm9 = vcmask 0  }
  0xa2   : > { %1165 = vmatprep.subr.msk.bf16.mxu1 %vm1830_vm2, %v1499_v29  ;;  %vm1837_vm3 = vmpackc.low %vm398_vm12, %vm394_vm11 }
  0xa3   : > { %1157 = vmatpush1.bf16.msk.msra.mxu0 %vm1837_vm3, %v1499_v29  ;;  %vm1844_vm5 = vmpackc.low %vm400_vm15, %vm396_vm1 }
  0xa4   : > { %1167 = vmatpush1.bf16.msk.msra.mxu1 %vm1844_vm5, %v1499_v29 }
  0xa6   : > { %1137 = vmatmul.mubr.msk.bf16.gmra.mrb[4].mxu0 %vm456_vm14, %v1284_v41 }
  0xa7   : > { %1147 = vmatmul.mubr.msk.bf16.gmra.mrb[4].mxu1 %vm456_vm14, %v1284_v41  ;;  %621 = vmatprep.mubr.bf16.mxu0 %v1498_v3 }
  0xa8   : > { %674 = vmatprep.mubr.bf16.mxu1 %v1498_v3 }
  0xae   : > { %1158 = vmatmul.mubr.msk.bf16.vlgmr.msra.gmra.mrb[8].mxu0 %vm456_vm14, %v1285_v44 }
  0xaf   : > { %1168 = vmatmul.mubr.msk.bf16.vlgmr.msra.gmra.mrb[8].mxu1 %vm456_vm14, %v1285_v44  ;;  %631 = vmatprep.mubr.bf16.mxu0 %v1498_v3 }
  0xb0   : > { %684 = vmatprep.mubr.bf16.mxu1 %v1498_v3 }
  0xb6   : > { %1159 = vmatmul.mubr.msk.bf16.gmra.mrb[12].mxu0 %vm456_vm14, %v1286_v45 }
  0xb7   : > { %1169 = vmatmul.mubr.msk.bf16.gmra.mrb[12].mxu1 %vm456_vm14, %v1286_v45  ;;  %1172 = vmatprep.mubr.msk.bf16.mxu0 %vm1781_vm0, %v1499_v29 }
  0xb8   : > { %1180 = vmatprep.mubr.msk.bf16.mxu1 %vm1790_vm4, %v1499_v29 }
 0x171   : > { %v1867_v46 = vpop.f32.mrb[0].mxu0 }
 0x172   : > { %v1869_v47 = vpop.f32.mrb[0].mxu1  ;;  %v1871_v48 = vpop.f32.mrb[1].mxu0 }
 0x173   : > { %v1873_v49 = vpop.f32.mrb[1].mxu1  ;;  %v1875_v50 = vpop.f32.mrb[2].mxu0 }
 0x174   : > { %v1877_v51 = vpop.f32.mrb[2].mxu1  ;;  %v1879_v52 = vpop.f32.mrb[3].mxu0 }
 0x175   : > { %v1881_v53 = vpop.f32.mrb[3].mxu1 }
 0x179   : > { %v1883_v54 = vpop.f32.mrb[4].mxu0 }
 0x17a   : > { %v1885_v55 = vpop.f32.mrb[4].mxu1  ;;  %v1887_v56 = vpop.f32.mrb[5].mxu0 }
 0x17b   : > { %v1889_v57 = vpop.f32.mrb[5].mxu1  ;;  %v1891_v58 = vpop.f32.mrb[6].mxu0 }
 0x17c   : > { %v1893_v59 = vpop.f32.mrb[6].mxu1  ;;  %v1895_v60 = vpop.f32.mrb[7].mxu0 }
 0x17d   : > { %v1897_v61 = vpop.f32.mrb[7].mxu1 }
 0x181   : > { %v623_v62 = vpop.f32.mrb[8].mxu0 }
 0x182   : > { %v695_v63 = vmul.f32 %v623_v62, %v1867_v46  ;;  %v676_v0 = vpop.f32.mrb[8].mxu1  ;;  %v625_v1 = vpop.f32.mrb[9].mxu0 }
 0x183   : > { %v697_v3 = vmul.f32 %v676_v0, %v1869_v47  ;;  %v696_v4 = vmul.f32 %v625_v1, %v1871_v48  ;;  %v678_v5 = vpop.f32.mrb[9].mxu1  ;;  %v627_v7 = vpop.f32.mrb[10].mxu0 }
 0x184   : > { %v698_v8 = vmul.f32 %v678_v5, %v1873_v49  ;;  %v699_v9 = vmul.f32 %v627_v7, %v1875_v50  ;;  %v680_v10 = vpop.f32.mrb[10].mxu1  ;;  %v629_v11 = vpop.f32.mrb[11].mxu0 }
 0x185   : > { %v701_v12 = vmul.f32 %v680_v10, %v1877_v51  ;;  %v700_v13 = vmul.f32 %v629_v11, %v1879_v52  ;;  %v682_v14 = vpop.f32.mrb[11].mxu1  ;;  %v750_v11 = vadd.s32 128, %v749_v34 }
 0x186   : > { %v711_v15 = vadd.f32 %v699_v9, %v695_v63  ;;  %v702_v16 = vmul.f32 %v682_v14, %v1881_v53  ;;  %v751_v9 = vadd.s32 256, %v749_v34 }
 0x187   : > { %v729_v17 = vadd.f32 %v701_v12, %v697_v3  ;;  %v720_v18 = vadd.f32 %v700_v13, %v696_v4  ;;  %v753_v12 = vstv %s1170_s20 }
 0x188   : > { %v738_v19 = vadd.f32 %v702_v16, %v698_v8 }
 0x189   : > { %v633_v20 = vpop.f32.mrb[12].mxu0 }
 0x18a   : > { %v703_v21 = vmul.f32 %v633_v20, %v1883_v54  ;;  %v686_v22 = vpop.f32.mrb[12].mxu1  ;;  %v635_v23 = vpop.f32.mrb[13].mxu0  ;;  %v754_v20 = vadd.s32 %v753_v12, %v749_v34 }
 0x18b   : > { %v705_v24 = vmul.f32 %v686_v22, %v1885_v55  ;;  %v704_v25 = vmul.f32 %v635_v23, %v1887_v56  ;;  %v688_v26 = vpop.f32.mrb[13].mxu1  ;;  %v637_v27 = vpop.f32.mrb[14].mxu0  ;;  %v755_v23 = vadd.s32 %v753_v12, %v750_v11 }
 0x18c   : > { %v712_v28 = vadd.f32 %v711_v15, %v703_v21  ;;  %v706_v30 = vmul.f32 %v688_v26, %v1889_v57  ;;  %v707_v31 = vmul.f32 %v637_v27, %v1891_v58  ;;  %v690_v32 = vpop.f32.mrb[14].mxu1  ;;  %v639_v33 = vpop.f32.mrb[15].mxu0  ;;  %v752_v15 = vadd.s32 384, %v749_v34 }
 0x18d   : > { %v730_v35 = vadd.f32 %v729_v17, %v705_v24  ;;  %v721_v36 = vadd.f32 %v720_v18, %v704_v25  ;;  %v709_v41 = vmul.f32 %v690_v32, %v1893_v59  ;;  %v708_v44 = vmul.f32 %v639_v33, %v1895_v60  ;;  %v692_v45 = vpop.f32.mrb[15].mxu1 }
 0x18e   : > { %v739_v62 = vadd.f32 %v738_v19, %v706_v30  ;;  %v713_v63 = vadd.f32 %v712_v28, %v707_v31  ;;  %v710_v0 = vmul.f32 %v692_v45, %v1897_v61  ;;  %v756_v24 = vadd.s32 %v753_v12, %v751_v9 }
 0x18f   : > { %v731_v1 = vadd.f32 %v730_v35, %v709_v41  ;;  %v722_v3 = vadd.f32 %v721_v36, %v708_v44  ;;  %v757_v27 = vadd.s32 %v753_v12, %v752_v15  ;;  %vm758_vm0 = vcmp.lt.s32.totalorder %v754_v20, 1200 }
 0x190   : > { %v714_v4 = vrot.slane %v713_v63, 4  ;;  %v740_v5 = vadd.f32 %v739_v62, %v710_v0  ;;  %vm759_vm4 = vcmp.lt.s32.totalorder %v755_v23, 1200  ;;  %vm760_vm6 = vcmp.lt.s32.totalorder %v756_v24, 1200 }
 0x191   : > { %v732_v7 = vrot.slane %v731_v1, 4  ;;  %v723_v8 = vrot.slane %v722_v3, 4  ;;  %vm761_vm8 = vcmp.lt.s32.totalorder %v757_v27, 1200 }
 0x192   : > { %v715_v2 = vadd.f32 %v714_v4, %v713_v63  ;;  %v741_v10 = vrot.slane %v740_v5, 4  ;;  %v766_v4 = vld [vmem:[#allocation3] sm:$0x1] }
 0x193   : > { %v733_v13 = vadd.f32 %v732_v7, %v731_v1  ;;  %v724_v14 = vadd.f32 %v723_v8, %v722_v3 }
 0x194   : > { %v716_v16 = vrot.slane %v715_v2, 2  ;;  %v742_v17 = vadd.f32 %v741_v10, %v740_v5 }
 0x195   : > { %v734_v18 = vrot.slane %v733_v13, 2  ;;  %v725_v19 = vrot.slane %v724_v14, 2 }
 0x196   : > { %v717_v21 = vadd.f32 %v716_v16, %v715_v2  ;;  %v743_v22 = vrot.slane %v742_v17, 2 }
 0x197   : > { %v735_v25 = vadd.f32 %v734_v18, %v733_v13  ;;  %v726_v26 = vadd.f32 %v725_v19, %v724_v14 }
 0x198   : > { %v744_v28 = vadd.f32 %v743_v22, %v742_v17  ;;  %v718_v30 = vrot.slane %v717_v21, 1 }
 0x199   : > { %v727_v31 = vrot.slane %v726_v26, 1  ;;  %v736_v32 = vrot.slane %v735_v25, 1 }
 0x19a   : > { %v719_v33 = vadd.f32 %v718_v30, %v717_v21  ;;  %v745_v35 = vrot.slane %v744_v28, 1 }
 0x19b   : > { %v728_v36 = vadd.f32 %v727_v31, %v726_v26  ;;  %v737_v41 = vadd.f32 %v736_v32, %v735_v25 }
 0x19c   : > { %v746_v34 = vadd.f32 %v745_v35, %v744_v28  ;;  %v762_v44 = vsel %vm758_vm0, %v719_v33, -1e+30 }
 0x19d   : > { %v763_v45 = vsel %vm759_vm4, %v728_v36, -1e+30  ;;  %v764_v62 = vsel %vm760_vm6, %v737_v41, -1e+30 }
 0x19e   : > { %v765_v63 = vsel %vm761_vm8, %v746_v34, -1e+30  ;;  %v767_v0 = vmax.f32 %v762_v44, %v763_v45 }
 0x19f   : > { %v768_v1 = vmax.f32 %v764_v62, %v765_v63 }
 0x1a1   : > { %v769_v3 = vmax.f32 %v767_v0, %v768_v1 }
 0x1a3   : > { %770 = vmax.xlane.f32.xlu0 %v769_v3 }
 0x230   : > { %v771_v5 = vpop.xlane.xlu0 %770 }
 0x231   : > { %v772_v7 = vmax.f32 %v766_v4, %v771_v5 }
 0x233   : > { %v773_v8 = vsub.f32 %v766_v4, %v772_v7  ;;  %807 = vst.msk [vmem:[#allocation3] sm:$0x1] %vm805_vm9, %v772_v7  ;;  %778 = vperm.xlu0 %1281, %v772_v7  }
 0x235   : > { %v774_v34 = vmul.f32 1.442695, %v773_v8 }
 0x2b2   : > { %v779_v9 = vpop.permute.xlu0 %778 }
 0x2b3   : > { %v784_v2 = vrot.slane %v779_v9, %v1726_v6 }
 0x2b5   : > { %v785_v10 = vsub.f32 %v762_v44, %v784_v2  ;;  %v786_v11 = vsub.f32 %v763_v45, %v784_v2  ;;  %v787_v12 = vsub.f32 %v764_v62, %v784_v2  ;;  %v788_v13 = vsub.f32 %v765_v63, %v784_v2  ;;  %v931_v63 = vld [vmem:[#allocation2 + $0x8] sm:$0xff] }
 0x2b7   : > { %v789_v14 = vmul.f32 1.442695, %v785_v10  ;;  %v791_v15 = vmul.f32 1.442695, %v786_v11  ;;  %v793_v16 = vmul.f32 1.442695, %v787_v12 }
 0x2b8   : > { %v795_v17 = vmul.f32 1.442695, %v788_v13  ;;  %v932_v10 = vld [vmem:[#allocation2 + $0x10] sm:$0xff]  ;;  %v933_v13 = vld [vmem:[#allocation2 + $0x18] sm:$0xff] }
 0x2b9   : > { %1287 = vpow2.f32 %v789_v14 }
 0x2ba   : > { %1289 = vpow2.f32 %v791_v15 }
 0x2bb   : > { %1291 = vpow2.f32 %v793_v16 }
 0x2bc   : > { %1293 = vpow2.f32 %v795_v17 }
 0x2bd   : > { %1295 = vpow2.f32 %v774_v34 }
 0x2c3   : > { %v1288_v18 = vpop.eup %1287 }
 0x2c4   : > { %v1290_v19 = vpop.eup %1289  ;;  %v808_v20 = vmul.f32 %v1288_v18, %v1867_v46  ;;  %v812_v21 = vmul.f32 %v1288_v18, %v1875_v50  ;;  %v816_v22 = vmul.f32 %v1288_v18, %v1883_v54  ;;  %v820_v23 = vmul.f32 %v1288_v18, %v1891_v58 }
 0x2c5   : > { %v1292_v24 = vpop.eup %1291  ;;  %v809_v25 = vmul.f32 %v1290_v19, %v1871_v48  ;;  %v813_v26 = vmul.f32 %v1290_v19, %v1879_v52  ;;  %v817_v27 = vmul.f32 %v1290_v19, %v1887_v56  ;;  %v821_v28 = vmul.f32 %v1290_v19, %v1895_v60 }
 0x2c6   : > { %v1294_v30 = vpop.eup %1293  ;;  %v824_v31 = vpack.c.bf16 %v812_v21, %v808_v20  ;;  %v810_v32 = vmul.f32 %v1292_v24, %v1869_v47  ;;  %v814_v46 = vmul.f32 %v1292_v24, %v1877_v51  ;;  %v799_v50 = vadd.f32 %v1290_v19, %v1288_v18 }
 0x2c7   : > { %v825_v33 = vpack.c.bf16 %v813_v26, %v809_v25  ;;  %v811_v54 = vmul.f32 %v1294_v30, %v1873_v49  ;;  %v815_v58 = vmul.f32 %v1294_v30, %v1881_v53  ;;  %v829_v35 = vpack.c.bf16 %v821_v28, %v817_v27 }
 0x2c8   : > { %v826_v48 = vpack.c.bf16 %v814_v46, %v810_v32  ;;  %v819_v52 = vmul.f32 %v1294_v30, %v1889_v57  ;;  %v823_v56 = vmul.f32 %v1294_v30, %v1897_v61  ;;  %v800_v36 = vadd.f32 %v1292_v24, %v799_v50  ;;  %v1296_v57 = vpop.eup %1295  ;;  %v930_v61 = vld [vmem:[#allocation2] sm:$0xff] }
 0x2c9   : > { %832 = vmatprep.subr.bf16.mxu0 %v825_v33  ;;  %v827_v60 = vpack.c.bf16 %v815_v58, %v811_v54  ;;  %v828_v41 = vpack.c.bf16 %v820_v23, %v816_v22  ;;  %v818_v47 = vmul.f32 %v1292_v24, %v1885_v55  ;;  %v822_v51 = vmul.f32 %v1292_v24, %v1893_v59  ;;  %v979_v33 = vld [vmem:[#allocation11] sm:$0xff] (!%p1187_p10)  ;;  %v980_v54 = vld [vmem:[#allocation11 + $0x8] sm:$0xff] (!%p1187_p10)  ;;  %v981_v58 = vld [vmem:[#allocation11 + $0x10] sm:$0xff] (!%p1187_p10) }
 0x2ca   : > { %833 = vmatpush1.bf16.xpose.msra.mxu0 %v824_v31  ;;  %v831_v44 = vpack.c.bf16 %v823_v56, %v819_v52  ;;  %v801_v49 = vadd.f32 %v1294_v30, %v800_v36  ;;  %v938_v55 = vrot.slane %v1296_v57, %v1726_v6  ;;  %v798_v39 = vmul.f32 %v1296_v57, %v797_v37 }
 0x2cb   : > { %881 = vmatprep.subr.bf16.mxu1 %v827_v60  ;;  %834 = vmatprep.subr.bf16.mxu0 %v829_v35  ;;  %v830_v53 = vpack.c.bf16 %v822_v51, %v818_v47  ;;  %v1500_v27 = vmov (!%p1187_p10), 0   ;;  %v982_v35 = vld [vmem:[#allocation11 + $0x18] sm:$0xff] (!%p1187_p10) }
 0x2cc   : > { %882 = vmatpush1.bf16.xpose.msra.mxu1 %v826_v48  ;;  %802 = vadd.xlane.f32.xlu1 %v801_v49 }
 0x2cd   : > { %883 = vmatprep.subr.bf16.mxu1 %v831_v44  ;;  %1297 = vset.pattern.permute.xlu0 (!%p1187_p10), %v1500_v27 }
 0x2d2   : > { %835 = vmatpush1.bf16.xpose.msra.mxu0 %v828_v41 }
 0x2d4   : > { %884 = vmatpush1.bf16.xpose.msra.mxu1 %v830_v53 }
 0x2d9   : > { %1174 = vmatmul.mubr.msk.bf16.vlgmr.msra.gmra.mrb[16].mxu0 %vm1800_vm7, %v1499_v29 }
 0x2da   : > { %1176 = vmatprep.mubr.msk.bf16.mxu0 %vm1820_vm13, %v1499_v29 }
 0x2db   : > { %1182 = vmatmul.mubr.msk.bf16.vlgmr.msra.gmra.mrb[16].mxu1 %vm1810_vm10, %v1499_v29 }
 0x2dc   : > { %1184 = vmatprep.mubr.msk.bf16.mxu1 %vm1830_vm2, %v1499_v29 }
 0x2dd   : > { %940 = vperm.xlu1 %1282, %v938_v55  }
 0x2e1   : > { %1178 = vmatmul.mubr.msk.bf16.gmra.mrb[20].mxu0 %vm1837_vm3, %v1499_v29 }
 0x2e3   : > { %1186 = vmatmul.mubr.msk.bf16.gmra.mrb[20].mxu1 %vm1844_vm5, %v1499_v29 }
 0x359   : > { %v803_v59 = vpop.xlane.xlu1 %802 }
 0x35a   : > { %v804_v38 = vadd.f32 %v803_v59, %v798_v39 }
 0x35c   : > { %806 = vst.msk [vmem:[#allocation4] sm:$0x1] %vm805_vm9, %v804_v38 }
 0x35d   : > { %v941_v45 = vpop.permute.xlu1 %940 }
 0x35e   : > { %v943_v3 = vmul.f32 %v941_v45, %v930_v61  ;;  %v944_v43 = vmul.f32 %v941_v45, %v931_v63  ;;  %v945_v16 = vmul.f32 %v941_v45, %v932_v10  ;;  %v946_v21 = vmul.f32 %v941_v45, %v933_v13 }
 0x363   : > { %v959_v26 = vld [vmem:[#allocation4] sm:$0x1] (!%p1187_p10) }
 0x364   : > { %1298 = vrcp.f32 (!%p1187_p10), %v959_v26 }
 0x36e   : > { %v1299_v28 = vpop.eup (!%p1187_p10), %1298 }
 0x36f   : > { %v970_v30 = vrot.slane (!%p1187_p10), %v1299_v28, %v1726_v6 }
 0x371   : > { %972 = vperm.xlu0 (!%p1187_p10), %1297, %v970_v30  }
 0x3ac   : > { %v866_v62 = vpop.f32.mrb[16].mxu0 }
 0x3ad   : > { %v868_v40 = vpop.f32.mrb[17].mxu0 }
 0x3ae   : > { %v915_v0 = vpop.f32.mrb[16].mxu1  ;;  %v869_v1 = vpop.f32.mrb[18].mxu0 }
 0x3af   : > { %v916_v42 = vadd.f32 %v915_v0, %v866_v62  ;;  %v917_v4 = vpop.f32.mrb[17].mxu1  ;;  %v871_v5 = vpop.f32.mrb[19].mxu0 }
 0x3b0   : > { %v918_v7 = vpop.f32.mrb[18].mxu1 }
 0x3b1   : > { %v947_v29 = vadd.f32 %v943_v3, %v916_v42  ;;  %v919_v8 = vadd.f32 %v918_v7, %v869_v1  ;;  %v920_v9 = vpop.f32.mrb[19].mxu1 }
 0x3b3   : > { %951 = vst.msk [vmem:[#allocation2] sm:$0xff] %vm456_vm14, %v947_v29  ;;  %v948_v2 = vadd.f32 %v944_v43, %v919_v8 }
 0x3b4   : > { %v874_v11 = vpop.f32.mrb[20].mxu0 }
 0x3b5   : > { %952 = vst.msk [vmem:[#allocation2 + $0x8] sm:$0xff] %vm456_vm14, %v948_v2  ;;  %v876_v12 = vpop.f32.mrb[21].mxu0 }
 0x3b6   : > { %v923_v14 = vpop.f32.mrb[20].mxu1  ;;  %v877_v15 = vpop.f32.mrb[22].mxu0 }
 0x3b7   : > { %v924_v17 = vadd.f32 %v923_v14, %v874_v11  ;;  %v925_v18 = vpop.f32.mrb[21].mxu1  ;;  %v879_v19 = vpop.f32.mrb[23].mxu0  ;;  %958 = sbr.rel (%p1187_p10) target bundleno = 1015 (0x3f7), region = 60 }
 0x3b8   : > { %v926_v20 = vpop.f32.mrb[22].mxu1 }
 0x3b9   : > { %v949_v22 = vadd.f32 %v945_v16, %v924_v17  ;;  %v927_v23 = vadd.f32 %v926_v20, %v877_v15  ;;  %v928_v24 = vpop.f32.mrb[23].mxu1 }
 0x3ba   : > { %v962_v31 = vld [vmem:[#allocation2] sm:$0xff] (!%p1187_p10) }
 0x3bb   : > { %953 = vst.msk [vmem:[#allocation2 + $0x10] sm:$0xff] %vm456_vm14, %v949_v22  ;;  %v950_v25 = vadd.f32 %v946_v21, %v927_v23 }
 0x3bc   : > { %v963_v32 = vld [vmem:[#allocation2 + $0x8] sm:$0xff] (!%p1187_p10) }
 0x3bd   : > { %954 = vst.msk [vmem:[#allocation2 + $0x18] sm:$0xff] %vm456_vm14, %v950_v25 }
 0x3c2   : > { %v964_v46 = vld [vmem:[#allocation2 + $0x10] sm:$0xff] }
 0x3c4   : > { %v965_v50 = vld [vmem:[#allocation2 + $0x18] sm:$0xff] }
 0x3f0   : > { %v973_v48 = vpop.permute.xlu0 %972 }
 0x3f1   : > { %v975_v52 = vmul.f32 %v973_v48, %v962_v31  ;;  %v976_v56 = vmul.f32 %v973_v48, %v963_v32  ;;  %v977_v36 = vmul.f32 %v973_v48, %v964_v46  ;;  %v978_v60 = vmul.f32 %v973_v48, %v965_v50 }
 0x3f3   : > { %v983_v41 = vadd.f32 %v979_v33, %v975_v52  ;;  %v984_v47 = vadd.f32 %v980_v54, %v976_v56  ;;  %v985_v51 = vadd.f32 %v981_v58, %v977_v36  ;;  %v986_v34 = vadd.f32 %v982_v35, %v978_v60 }
 0x3f5   : > { %987 = vst.msk [vmem:[#allocation13] sm:$0xff] %vm456_vm14, %v983_v41  ;;  %988 = vst.msk [vmem:[#allocation13 + $0x8] sm:$0xff] %vm456_vm14, %v984_v47 }
 0x3f6   : > { %989 = vst.msk [vmem:[#allocation13 + $0x10] sm:$0xff] %vm456_vm14, %v985_v51  ;;  %990 = vst.msk [vmem:[#allocation13 + $0x18] sm:$0xff] %vm456_vm14, %v986_v34 }
 0x3f7 PF: > { %p1232_p12 = scmp.eq.s32.totalorder %s1548_s19, 2  ;;  %s1501_s21 = smov [#allocation13]  }
 0x3f8   : > { %s997_s14 = sshll.u32 %s1501_s21, 4  ;;  %s998_s14 = int_to_ptr.vmem [resolvable:$true] %s997_s14 }
 0x3f9   : > { %s1414_s28 = scalar_lea.vmem %s998_s14, 512  ;;  %p1421_p9 = scmp.lt.s32.totalorder %s998_s14, %s998_s14 }
 0x3fa   : > { %p1415_p13 = scmp.ne.s32.totalorder %s998_s14, %s1414_s28  ;;  %p1422_p11 = scmp.lt.s32.totalorder %s1414_s28, %s1414_s28 }
 0x3fc   : > { %p1416_p0 = pnand %p1415_p13, %p1232_p12  ;;  %p1423_p7 = por %p1422_p11, %p1421_p9 }
 0x3fe   : > { %p1417_p3 = pneg %p1416_p0 }
 0x400   : > { %p1424_p2 = pnand %p1423_p7, %p1417_p3 }
 0x402   : > { %1427 = shalt.err (!%p1424_p2)
}
 0x403   : > { %s1428_s18 = scalar_lea.hbm %s2005_s4, 512 }
 0x404   : > { %p1429_p1 = scmp.ne.s32.totalorder %s2005_s4, %s1428_s18  ;;  %p1434_p5 = scmp.lt.u32.totalorder %s1428_s18, %s2005_s4 }
 0x406   : > { %p1430_p4 = pnand %p1429_p1, %p1232_p12 }
 0x408   : > { %p1431_p8 = pneg %p1430_p4 }
 0x40a   : > { %p1436_p6 = pnand %p1434_p5, %p1431_p8 }
 0x40c   : > { %1439 = shalt.err (!%p1436_p6)
}
 0x40d   : > { %s1502_s8 = smov 128   ;;  %s1503_s12 = smov 8  }
 0x40e   : > { %1208 = dma.vmem_to_hbm [thread:$0]  (%p1232_p12), %s998_s14, 512, %s2005_s4, [#allocation7], %s1502_s8, %s1502_s8, %s1503_s12  }
 0x40f   : > { %1469 = dma.done.wait (%p1232_p12), [#allocation7], 512  }
 0x410   : > { %1471 = vsyncadd (%p1232_p12), [#allocation7], 4294966784 }
 0x411 PF: > { %p17_p10 = scmp.ge.s32.totalorder %s1651_s30, 5   ;;  %s2037_s15 = smov %s1478_s16 }
 0x412   : > { %s2038_s16 = smov %s1482_s17  ;;  %s2039_s17 = smov %s1661_s23 }
 0x413   : > { %s2040_s18 = smov %s1651_s30  ;;  %19 = sbr.rel (!%p17_p10) target bundleno = 6 (0x6), region = 93 }
 0x41a   :  { %1013 = vsyncpa [#allocation6], 1 }
 0x41b   :  { %1015 = vsyncpa [#allocation6 + $0x1], 1 }
 0x41c   :  { %1016 = vsyncpa [#allocation9], 1 }
 0x41d   :  { %1017 = vsyncpa [#allocation12], 1 }
 0x41e   :  { %1018 = vsyncpa [#allocation7], 1 }
 0x41f   :  { %1020 = vsyncpa [#allocation7 + $0x1], 1 }

</bundles_post_ra>
